<compile_context>
chip_gen: v7x
topology: tpu7x:2x2x1
jax: 0.10.0
libtpu: 0.0.40
codegen_flags: <defaults>
</compile_context>

<pallas_src>
import math
from functools import partial

import jax
import jax.numpy as jnp
from jax.experimental import pallas as pl
from jax.experimental.pallas import tpu as pltpu


def mha_kernel(x_ref, wqkv_ref, bqkv_ref, mask_ref, wo_ref, bo_ref, out_ref, *,
               batch: int, seq_len: int, n_heads: int, head_dim: int,
               approx_reciprocal: bool):
    """Single-step kernel. x_ref / out_ref are (B*S, D)."""
    B, S, H, hd = batch, seq_len, n_heads, head_dim
    D = H * hd

    x = x_ref[...]                                                      # (B*S, D) f32

    # ---- fused QKV projection: one (B*S, D) @ (D, 3D) MXU matmul ----
    qkv = jnp.dot(x, wqkv_ref[...],
                  preferred_element_type=jnp.float32) + bqkv_ref[...]   # (B*S, 3D) f32

    # ---- regroup to head-major (H*B, S, hd) only for the attention core ----
    def to_heads(col0):
        strips = [qkv[:, col0 + h * hd: col0 + (h + 1) * hd].reshape(B, S, hd)
                  for h in range(H)]
        return jnp.concatenate(strips, axis=0)                          # (H*B, S, hd)

    q = to_heads(0)
    k = to_heads(D)
    v = to_heads(2 * D)

    # ---- causal attention, batched over H*B ----
    scale = jnp.float32(1.0 / math.sqrt(hd))
    s = jnp.einsum("bqd,bkd->bqk", q, k,
                   preferred_element_type=jnp.float32) * scale          # (H*B, S, S) f32
    s = s + mask_ref[...]                                               # additive 0 / -1e30 mask

    m = jnp.max(s, axis=-1, keepdims=True)
    e = jnp.exp(s - m)
    denom = jnp.sum(e, axis=-1, keepdims=True)
    p = e * pl.reciprocal(denom, approx=approx_reciprocal)              # EUP slot when approx
    # TODO(synk): dropout(0.2) on p skipped (eval-mode identity).

    o = jnp.einsum("bqk,bkd->bqd", p, v,
                   preferred_element_type=jnp.float32)                  # (H*B, S, hd) f32

    # ---- lane-concatenate heads back to (B*S, D); single (D, D) output projection ----
    o_cols = [o[h * B:(h + 1) * B].reshape(B * S, hd) for h in range(H)]
    o2 = jnp.concatenate(o_cols, axis=-1)                               # (B*S, D)
    out = jnp.dot(o2, wo_ref[...],
                  preferred_element_type=jnp.float32) + bo_ref[...]     # (B*S, D) f32
    out_ref[...] = out.astype(out_ref.dtype)


def multi_head_attention(x, params, *, n_heads: int, approx_reciprocal: bool = True):
    """x: (B, S, D) float32. Weights stored (in_features, out_features): y = x @ W + b."""
    B, S, D = x.shape
    hd = D // n_heads
    assert n_heads * hd == D
    wq, bq, wk, bk, wv, bv, wo, bo = params

    # ---- wrapper-side packing (one-time, outside the kernel) ----
    w_qkv = jnp.concatenate([wq, wk, wv], axis=1).astype(jnp.float32)            # (D, 3D)
    b_qkv = jnp.concatenate([bq, bk, bv]).reshape(1, 3 * D).astype(jnp.float32)  # (1, 3D)
    wo_f = wo.astype(jnp.float32)                                                # (D, D)
    bo_f = bo.reshape(1, D).astype(jnp.float32)                                  # (1, D)

    row = jnp.arange(S, dtype=jnp.int32)[:, None]
    col = jnp.arange(S, dtype=jnp.int32)[None, :]
    mask = jnp.where(col > row, jnp.float32(-1e30), jnp.float32(0.0))            # (S, S)

    x2 = x.reshape(B * S, D).astype(jnp.float32)

    kernel = partial(mha_kernel, batch=B, seq_len=S, n_heads=n_heads, head_dim=hd,
                     approx_reciprocal=approx_reciprocal)

    vmem = pltpu.MemorySpace.VMEM
    out2 = pl.pallas_call(
        kernel,
        out_shape=jax.ShapeDtypeStruct((B * S, D), x.dtype),
        in_specs=[pl.BlockSpec(memory_space=vmem)] * 6,   # whole arrays, resident in VMEM
        out_specs=pl.BlockSpec(memory_space=vmem),
    )(x2, w_qkv, b_qkv, mask, wo_f, bo_f)
    return out2.reshape(B, S, D)


def reference_mha(x, params, *, n_heads: int):
    """Pure-JAX f32 reference mirroring the PyTorch forward (eval-mode dropout)."""
    wq, bq, wk, bk, wv, bv, wo, bo = params
    B, S, D = x.shape
    hd = D // n_heads

    def proj(w, b):
        return (x @ w + b).reshape(B, S, n_heads, hd).transpose(0, 2, 1, 3)

    Q, K, V = proj(wq, bq), proj(wk, bk), proj(wv, bv)
    scores = jnp.einsum("bhqd,bhkd->bhqk", Q, K) / math.sqrt(hd)
    mask = jnp.triu(jnp.ones((S, S), dtype=bool), k=1)
    scores = jnp.where(mask, -jnp.inf, scores)
    attn = jax.nn.softmax(scores, axis=-1)
    out = jnp.einsum("bhqk,bhkd->bhqd", attn, V)
    out = out.transpose(0, 2, 1, 3).reshape(B, S, D)
    return out @ wo + bo


if __name__ == "__main__":
    B, S, D, H = 2, 8, 32, 4

    key = jax.random.PRNGKey(0)
    keys = jax.random.split(key, 9)
    scale = 1.0 / math.sqrt(D)
    wq = jax.random.uniform(keys[0], (D, D), jnp.float32, -scale, scale)
    bq = jax.random.uniform(keys[1], (D,), jnp.float32, -scale, scale)
    wk = jax.random.uniform(keys[2], (D, D), jnp.float32, -scale, scale)
    bk = jax.random.uniform(keys[3], (D,), jnp.float32, -scale, scale)
    wv = jax.random.uniform(keys[4], (D, D), jnp.float32, -scale, scale)
    bv = jax.random.uniform(keys[5], (D,), jnp.float32, -scale, scale)
    wo = jax.random.uniform(keys[6], (D, D), jnp.float32, -scale, scale)
    bo = jax.random.uniform(keys[7], (D,), jnp.float32, -scale, scale)
    params = (wq, bq, wk, bk, wv, bv, wo, bo)

    x = jax.random.normal(keys[8], (B, S, D), jnp.float32)

    ref = reference_mha(x, params, n_heads=H)

    # 1) Exact-reciprocal path.
    out_exact = multi_head_attention(x, params, n_heads=H, approx_reciprocal=False)
    out_exact = jax.block_until_ready(out_exact)
    assert out_exact.shape == (B, S, D)
    assert jnp.allclose(out_exact, ref, atol=2e-2, rtol=2e-2), "kernel mismatch vs reference"

    # 2) Production path: EUP approximate reciprocal in the softmax normalization.
    out_approx = multi_head_attention(x, params, n_heads=H, approx_reciprocal=True)
    out_approx = jax.block_until_ready(out_approx)
    assert out_approx.shape == (B, S, D)
    assert jnp.allclose(out_approx, ref, atol=3e-2, rtol=3e-2), "approx-reciprocal mismatch"

    print("KERNEL_OK")
</pallas_src>

<mosaic_0001>
module attributes {stable_mosaic.version = 11 : i64} {
  func.func @mha_kernel(%arg0: memref<16x32xf32, #tpu.memory_space<vmem>>, %arg1: memref<32x96xf32, #tpu.memory_space<vmem>>, %arg2: memref<1x96xf32, #tpu.memory_space<vmem>>, %arg3: memref<8x8xf32, #tpu.memory_space<vmem>>, %arg4: memref<32x32xf32, #tpu.memory_space<vmem>>, %arg5: memref<1x32xf32, #tpu.memory_space<vmem>>, %arg6: memref<16x32xf32, #tpu.memory_space<vmem>>) attributes {dimension_semantics = [], scalar_prefetch = 0 : i64, scratch_operands = 0 : i64, tpu.core_type = #tpu.core_type<tc>} {
    %c0 = arith.constant 0 : index
    %c0_0 = arith.constant 0 : index
    %0 = vector.load %arg0[%c0, %c0_0] : memref<16x32xf32, #tpu.memory_space<vmem>>, vector<16x32xf32>
    %c0_1 = arith.constant 0 : index
    %c0_2 = arith.constant 0 : index
    %1 = vector.load %arg1[%c0_1, %c0_2] : memref<32x96xf32, #tpu.memory_space<vmem>>, vector<32x96xf32>
    %cst = arith.constant dense<0.000000e+00> : vector<16x96xf32>
    %2 = tpu.matmul %0, %1, %cst {dimension_numbers = #tpu.dot_dimension_numbers<[1], [0], [0], [1], [0, 0, 1, 1], [], []>} : vector<16x32xf32>, vector<32x96xf32>, vector<16x96xf32> -> vector<16x96xf32>
    %c0_3 = arith.constant 0 : index
    %c0_4 = arith.constant 0 : index
    %3 = vector.load %arg2[%c0_3, %c0_4] : memref<1x96xf32, #tpu.memory_space<vmem>>, vector<1x96xf32>
    %4 = vector.broadcast %3 : vector<1x96xf32> to vector<16x96xf32>
    %5 = arith.addf %2, %4 : vector<16x96xf32>
    %6 = vector.extract_strided_slice %5 {offsets = [0, 0], sizes = [16, 8], strides = [1, 1]} : vector<16x96xf32> to vector<16x8xf32>
    %7 = vector.shape_cast %6 : vector<16x8xf32> to vector<2x8x8xf32>
    %8 = vector.extract_strided_slice %5 {offsets = [0, 8], sizes = [16, 8], strides = [1, 1]} : vector<16x96xf32> to vector<16x8xf32>
    %9 = vector.shape_cast %8 : vector<16x8xf32> to vector<2x8x8xf32>
    %10 = vector.extract_strided_slice %5 {offsets = [0, 16], sizes = [16, 8], strides = [1, 1]} : vector<16x96xf32> to vector<16x8xf32>
    %11 = vector.shape_cast %10 : vector<16x8xf32> to vector<2x8x8xf32>
    %12 = vector.extract_strided_slice %5 {offsets = [0, 24], sizes = [16, 8], strides = [1, 1]} : vector<16x96xf32> to vector<16x8xf32>
    %13 = vector.shape_cast %12 : vector<16x8xf32> to vector<2x8x8xf32>
    %14 = tpu.concatenate %7, %9, %11, %13 in 0 : vector<2x8x8xf32>, vector<2x8x8xf32>, vector<2x8x8xf32>, vector<2x8x8xf32> -> vector<8x8x8xf32>
    %15 = vector.extract_strided_slice %5 {offsets = [0, 32], sizes = [16, 8], strides = [1, 1]} : vector<16x96xf32> to vector<16x8xf32>
    %16 = vector.shape_cast %15 : vector<16x8xf32> to vector<2x8x8xf32>
    %17 = vector.extract_strided_slice %5 {offsets = [0, 40], sizes = [16, 8], strides = [1, 1]} : vector<16x96xf32> to vector<16x8xf32>
    %18 = vector.shape_cast %17 : vector<16x8xf32> to vector<2x8x8xf32>
    %19 = vector.extract_strided_slice %5 {offsets = [0, 48], sizes = [16, 8], strides = [1, 1]} : vector<16x96xf32> to vector<16x8xf32>
    %20 = vector.shape_cast %19 : vector<16x8xf32> to vector<2x8x8xf32>
    %21 = vector.extract_strided_slice %5 {offsets = [0, 56], sizes = [16, 8], strides = [1, 1]} : vector<16x96xf32> to vector<16x8xf32>
    %22 = vector.shape_cast %21 : vector<16x8xf32> to vector<2x8x8xf32>
    %23 = tpu.concatenate %16, %18, %20, %22 in 0 : vector<2x8x8xf32>, vector<2x8x8xf32>, vector<2x8x8xf32>, vector<2x8x8xf32> -> vector<8x8x8xf32>
    %24 = vector.extract_strided_slice %5 {offsets = [0, 64], sizes = [16, 8], strides = [1, 1]} : vector<16x96xf32> to vector<16x8xf32>
    %25 = vector.shape_cast %24 : vector<16x8xf32> to vector<2x8x8xf32>
    %26 = vector.extract_strided_slice %5 {offsets = [0, 72], sizes = [16, 8], strides = [1, 1]} : vector<16x96xf32> to vector<16x8xf32>
    %27 = vector.shape_cast %26 : vector<16x8xf32> to vector<2x8x8xf32>
    %28 = vector.extract_strided_slice %5 {offsets = [0, 80], sizes = [16, 8], strides = [1, 1]} : vector<16x96xf32> to vector<16x8xf32>
    %29 = vector.shape_cast %28 : vector<16x8xf32> to vector<2x8x8xf32>
    %30 = vector.extract_strided_slice %5 {offsets = [0, 88], sizes = [16, 8], strides = [1, 1]} : vector<16x96xf32> to vector<16x8xf32>
    %31 = vector.shape_cast %30 : vector<16x8xf32> to vector<2x8x8xf32>
    %32 = tpu.concatenate %25, %27, %29, %31 in 0 : vector<2x8x8xf32>, vector<2x8x8xf32>, vector<2x8x8xf32>, vector<2x8x8xf32> -> vector<8x8x8xf32>
    "tpu.trace_start"() <{level = 10 : i32, message = "bqd,bkd->bqk"}> : () -> ()
    %cst_5 = arith.constant dense<0.000000e+00> : vector<8x8x8xf32>
    %33 = tpu.matmul %14, %23, %cst_5 {dimension_numbers = #tpu.dot_dimension_numbers<[2], [2], [1], [1], [0, 0, 0, 1, 1, 1], [0], [0]>} : vector<8x8x8xf32>, vector<8x8x8xf32>, vector<8x8x8xf32> -> vector<8x8x8xf32>
    "tpu.trace_stop"() : () -> ()
    %cst_6 = arith.constant 0.353553385 : f32
    %34 = vector.broadcast %cst_6 : f32 to vector<8x8x8xf32>
    %35 = arith.mulf %33, %34 : vector<8x8x8xf32>
    %c0_7 = arith.constant 0 : index
    %c0_8 = arith.constant 0 : index
    %36 = vector.load %arg3[%c0_7, %c0_8] : memref<8x8xf32, #tpu.memory_space<vmem>>, vector<8x8xf32>
    %37 = vector.shape_cast %36 : vector<8x8xf32> to vector<1x8x8xf32>
    %38 = vector.broadcast %37 : vector<1x8x8xf32> to vector<8x8x8xf32>
    %39 = arith.addf %35, %38 : vector<8x8x8xf32>
    %cst_9 = arith.constant dense<0xFF800000> : vector<8x8xf32>
    %40 = vector.multi_reduction <maximumf>, %39, %cst_9 [2] : vector<8x8x8xf32> to vector<8x8xf32>
    %41 = vector.shape_cast %40 : vector<8x8xf32> to vector<8x8x1xf32>
    %42 = vector.broadcast %41 : vector<8x8x1xf32> to vector<8x8x8xf32>
    %43 = arith.subf %39, %42 : vector<8x8x8xf32>
    %44 = math.exp %43 : vector<8x8x8xf32>
    %cst_10 = arith.constant dense<0.000000e+00> : vector<8x8xf32>
    %45 = vector.multi_reduction <add>, %44, %cst_10 [2] : vector<8x8x8xf32> to vector<8x8xf32>
    %46 = vector.shape_cast %45 : vector<8x8xf32> to vector<8x8x1xf32>
    %47 = tpu.reciprocal %46 : vector<8x8x1xf32> -> vector<8x8x1xf32>
    %48 = vector.broadcast %47 : vector<8x8x1xf32> to vector<8x8x8xf32>
    %49 = arith.mulf %44, %48 : vector<8x8x8xf32>
    "tpu.trace_start"() <{level = 10 : i32, message = "bqk,bkd->bqd"}> : () -> ()
    %cst_11 = arith.constant dense<0.000000e+00> : vector<8x8x8xf32>
    %50 = tpu.matmul %49, %32, %cst_11 {dimension_numbers = #tpu.dot_dimension_numbers<[2], [1], [1], [2], [0, 0, 0, 1, 1, 2], [0], [0]>} : vector<8x8x8xf32>, vector<8x8x8xf32>, vector<8x8x8xf32> -> vector<8x8x8xf32>
    "tpu.trace_stop"() : () -> ()
    %51 = vector.extract_strided_slice %50 {offsets = [0, 0, 0], sizes = [2, 8, 8], strides = [1, 1, 1]} : vector<8x8x8xf32> to vector<2x8x8xf32>
    %52 = vector.shape_cast %51 : vector<2x8x8xf32> to vector<16x8xf32>
    %53 = vector.extract_strided_slice %50 {offsets = [2, 0, 0], sizes = [2, 8, 8], strides = [1, 1, 1]} : vector<8x8x8xf32> to vector<2x8x8xf32>
    %54 = vector.shape_cast %53 : vector<2x8x8xf32> to vector<16x8xf32>
    %55 = vector.extract_strided_slice %50 {offsets = [4, 0, 0], sizes = [2, 8, 8], strides = [1, 1, 1]} : vector<8x8x8xf32> to vector<2x8x8xf32>
    %56 = vector.shape_cast %55 : vector<2x8x8xf32> to vector<16x8xf32>
    %57 = vector.extract_strided_slice %50 {offsets = [6, 0, 0], sizes = [2, 8, 8], strides = [1, 1, 1]} : vector<8x8x8xf32> to vector<2x8x8xf32>
    %58 = vector.shape_cast %57 : vector<2x8x8xf32> to vector<16x8xf32>
    %59 = tpu.concatenate %52, %54, %56, %58 in 1 : vector<16x8xf32>, vector<16x8xf32>, vector<16x8xf32>, vector<16x8xf32> -> vector<16x32xf32>
    %c0_12 = arith.constant 0 : index
    %c0_13 = arith.constant 0 : index
    %60 = vector.load %arg4[%c0_12, %c0_13] : memref<32x32xf32, #tpu.memory_space<vmem>>, vector<32x32xf32>
    %cst_14 = arith.constant dense<0.000000e+00> : vector<16x32xf32>
    %61 = tpu.matmul %59, %60, %cst_14 {dimension_numbers = #tpu.dot_dimension_numbers<[1], [0], [0], [1], [0, 0, 1, 1], [], []>} : vector<16x32xf32>, vector<32x32xf32>, vector<16x32xf32> -> vector<16x32xf32>
    %c0_15 = arith.constant 0 : index
    %c0_16 = arith.constant 0 : index
    %62 = vector.load %arg5[%c0_15, %c0_16] : memref<1x32xf32, #tpu.memory_space<vmem>>, vector<1x32xf32>
    %63 = vector.broadcast %62 : vector<1x32xf32> to vector<16x32xf32>
    %64 = arith.addf %61, %63 : vector<16x32xf32>
    %c0_17 = arith.constant 0 : index
    %c0_18 = arith.constant 0 : index
    %65 = vector.load %arg6[%c0_17, %c0_18] : memref<16x32xf32, #tpu.memory_space<vmem>>, vector<16x32xf32>
    tpu.vector_store %arg6[%c0_17, %c0_18], %64 {strides = array<i32>} : memref<16x32xf32, #tpu.memory_space<vmem>>, vector<16x32xf32>,
    return
  }
}

</mosaic_0001>

<bundles_post_ra>
// kernel: tpu_custom_call.1
= control target key start
LH: loop header
LB: loop body
LE: loop exit
PB: predicated region body
PF: predicated region fallthrough
CT: control target
= control target key end

     0   :  { %11 = vsyncpa [#allocation3], 0  ;;  %s2263_s0 = inlined_call_operand.hbm [shape: f32[16,32], index: 0, kind: input, shape index: {}]   ;;  %s2264_s1 = inlined_call_operand.hbm [shape: f32[32,96], index: 1, kind: input, shape index: {}]   ;;  %s2265_s2 = inlined_call_operand.vmem [shape: f32[1,96], index: 2, kind: input, shape index: {}]   ;;  %s2266_s3 = inlined_call_operand.vmem [shape: f32[8,8], index: 3, kind: input, shape index: {}]   ;;  %s2267_s4 = inlined_call_operand.hbm [shape: f32[32,32], index: 4, kind: input, shape index: {}]   ;;  %s2268_s5 = inlined_call_operand.vmem [shape: f32[1,32], index: 5, kind: input, shape index: {}]   ;;  %s2269_s6 = inlined_call_operand.hbm [shape: f32[16,32], index: 6, kind: output, shape index: {}]  }
   0x1   :  { %12 = vsyncpa [#allocation6], 0 }
   0x2   :  { %13 = vsyncpa [#allocation4], 0  ;;  %s1973_s21 = smov [#allocation5]   ;;  %s1974_s23 = smov [#allocation2]  }
   0x3   :  { %s31_s22 = sshll.u32 %s1973_s21, 4  ;;  %s19_s24 = sshll.u32 %s1974_s23, 4  ;;  %s32_s22 = int_to_ptr.vmem [resolvable:$true] %s31_s22  ;;  %s2023_s24 = int_to_ptr.vmem [resolvable:$true] %s19_s24 }
   0x4   :  { %s1879_s27 = scalar_lea.hbm %s2264_s1, 512 }
   0x5   :  { %p1880_p0 = scmp.ne.s32.totalorder %s2264_s1, %s1879_s27  ;;  %p1883_p1 = scmp.lt.u32.totalorder %s1879_s27, %s2264_s1 }
   0x7   :  { %p1885_p2 = pnand %p1883_p1, %p1880_p0 }
   0x9   :  { %1888 = shalt.err (!%p1885_p2)
}
   0xa   :  { %s1889_s8 = scalar_lea.vmem %s32_s22, 512  ;;  %p1894_p4 = scmp.lt.s32.totalorder %s32_s22, %s32_s22 }
   0xb   :  { %p1890_p3 = scmp.ne.s32.totalorder %s32_s22, %s1889_s8  ;;  %p1895_p5 = scmp.lt.s32.totalorder %s1889_s8, %s1889_s8 }
   0xd   :  { %p1896_p6 = por %p1895_p5, %p1894_p4 }
   0xf   :  { %p1897_p7 = pnand %p1896_p6, %p1890_p3 }
  0x11   :  { %1900 = shalt.err (!%p1897_p7)
}
  0x12   :  { %s1975_s9 = smov 128   ;;  %s1976_s10 = smov 8  }
  0x13   :  { %37 = dma.hbm_to_vmem [thread:$0]  %s2264_s1, 512, %s32_s22, [#allocation6], %s1975_s9, %s1975_s9, %s1976_s10  }
  0x14   :  { %s1901_s15 = scalar_lea.hbm %s2263_s0, 256 }
  0x15   :  { %p1902_p8 = scmp.ne.s32.totalorder %s2263_s0, %s1901_s15  ;;  %p1905_p9 = scmp.lt.u32.totalorder %s1901_s15, %s2263_s0 }
  0x17   :  { %p1907_p10 = pnand %p1905_p9, %p1902_p8 }
  0x19   :  { %1910 = shalt.err (!%p1907_p10)
}
  0x1a   :  { %s1911_s20 = scalar_lea.vmem %s2023_s24, 256  ;;  %p1916_p12 = scmp.lt.s32.totalorder %s2023_s24, %s2023_s24 }
  0x1b   :  { %p1912_p11 = scmp.ne.s32.totalorder %s2023_s24, %s1911_s20  ;;  %p1917_p13 = scmp.lt.s32.totalorder %s1911_s20, %s1911_s20 }
  0x1d   :  { %p1918_p0 = por %p1917_p13, %p1916_p12 }
  0x1f   :  { %p1919_p1 = pnand %p1918_p0, %p1912_p11 }
  0x21   :  { %1922 = shalt.err (!%p1919_p1)
}
  0x22   :  { %25 = dma.hbm_to_vmem [thread:$0]  %s2263_s0, 256, %s2023_s24, [#allocation3], %s1975_s9, %s1975_s9, %s1976_s10  }
  0x23   :  { %s1977_s22 = smov [#allocation7]   ;;  %s1923_s27 = scalar_lea.hbm %s2267_s4, 512 }
  0x24   :  { %s47_s23 = sshll.u32 %s1977_s22, 4  ;;  %p1924_p2 = scmp.ne.s32.totalorder %s2267_s4, %s1923_s27  ;;  %s48_s23 = int_to_ptr.vmem [resolvable:$true] %s47_s23 }
  0x25   :  { %p1927_p3 = scmp.lt.u32.totalorder %s1923_s27, %s2267_s4 }
  0x27   :  { %p1929_p4 = pnand %p1927_p3, %p1924_p2 }
  0x29   :  { %1932 = shalt.err (!%p1929_p4)
}
  0x2a   :  { %s1933_s8 = scalar_lea.vmem %s48_s23, 512  ;;  %p1938_p6 = scmp.lt.s32.totalorder %s48_s23, %s48_s23 }
  0x2b   :  { %p1934_p5 = scmp.ne.s32.totalorder %s48_s23, %s1933_s8  ;;  %p1939_p7 = scmp.lt.s32.totalorder %s1933_s8, %s1933_s8 }
  0x2d   :  { %p1940_p8 = por %p1939_p7, %p1938_p6 }
  0x2f   :  { %p1941_p9 = pnand %p1940_p8, %p1934_p5 }
  0x31   :  { %1944 = shalt.err (!%p1941_p9)
}
  0x32   :  { %53 = dma.hbm_to_vmem [thread:$0]  %s2267_s4, 512, %s48_s23, [#allocation6], %s1975_s9, %s1975_s9, %s1976_s10  }
  0x33   :  { %1967 = dma.done.wait [#allocation3], 256  }
  0x34   :  { %1968 = vsyncadd [#allocation3], 4294967040 }
  0x35   :  { %1969 = dma.done.wait [#allocation6], 1024  }
  0x36   :  { %1970 = vsyncadd [#allocation6], 4294966272  ;;  %vm78_vm0 = vcmask 261120   ;;  %v67_v0 = vld [vmem:[#allocation5] sm:$0xff]  ;;  %v68_v1 = vld [vmem:[#allocation5 + $0x8] sm:$0xff]  ;;  %v1978_v10 = vmov 0.0  }
  0x37   :  { %v69_v2 = vld [vmem:[#allocation5 + $0x10] sm:$0xff]  ;;  %v1816_v3 = vpack.c.bf16 %v68_v1, %v67_v0  ;;  %v70_v4 = vld [vmem:[#allocation5 + $0x18] sm:$0xff]  ;;  %1725 = vmatprep.subr.mxu1 %v1978_v10  ;;  %s1979_s12 = smov 112   ;;  %s1980_s13 = smov 120   ;;  %vm1981_vm1 = vmmov 0   ;;  %vm176_vm2 = vcmask 64512  }
  0x38   :  { %v65_v5 = vld [vmem:[#allocation2] sm:$0xff]  ;;  %v1820_v6 = vpack.c.bf16 %v70_v4, %v69_v2  ;;  %v66_v7 = vld [vmem:[#allocation2 + $0x8] sm:$0xff]  ;;  %1727 = vmatprep.mubr.msk.f32.mxu1 %vm1981_vm1, %v1978_v10  ;;  %s1983_s14 = smov 96   ;;  %s1985_s17 = smov 16   ;;  %vm1522_vm3 = vcmask 130048   ;;  %vm1525_vm4 = vcmask 195584  }
  0x39   :  { %1722 = vmatprep.mubr.msk.f32.mxu0 %vm78_vm0, %v65_v5  ;;  %1817 = vmatprep.subr.bf16.mxu0 %v1816_v3  ;;  %v1640_v8 = vld [vmem:[%s2265_s2] ss:$0 sm:$0xff]  ;;  %s1982_s2 = smov 104   ;;  %s1986_s18 = smov 24  }
  0x3a   :  { %1819 = vmatpush3.bf16.msra.mxu0 %v1816_v3  ;;  %v791_v29 = vld [vmem:[%s2266_s3] sm:$0xff]  ;;  %s1984_s3 = smov 64   ;;  %s1987_s1 = smov [#allocation8]  }
  0x3b   :  { %1821 = vmatprep.subr.bf16.mxu0 %v1820_v6  ;;  %s1627_s21 = sshll.u32 %s1987_s1, 4  ;;  %s1628_s21 = int_to_ptr.vmem [resolvable:$true] %s1627_s21 }
  0x3c   :  { %s1945_s22 = scalar_lea.vmem %s1628_s21, 256  ;;  %p1950_p11 = scmp.lt.s32.totalorder %s1628_s21, %s1628_s21 }
  0x3d   :  { %p1946_p10 = scmp.ne.s32.totalorder %s1628_s21, %s1945_s22  ;;  %p1951_p12 = scmp.lt.s32.totalorder %s1945_s22, %s1945_s22 }
  0x3e   :  { %1823 = vmatpush3.bf16.msra.mxu0 %v1820_v6 }
  0x3f   :  { %1745 = vmatprep.subr.mxu0 %v1978_v10  ;;  %p1952_p13 = por %p1951_p12, %p1950_p11 }
  0x41   :  { %1723 = vmatmul.mubr.msk.f32.vlgmr.msra.gmra.mrb[0].mxu0 %vm78_vm0, %v66_v7  ;;  %p1953_p0 = pnand %p1952_p13, %p1946_p10 }
  0x42   :  { %1747 = vmatprep.mubr.msk.f32.mxu0 %vm1981_vm1, %v1978_v10 }
 0x114   :  { %v1724_v9 = vpop.f32.mrb[0].mxu0 }
 0x115   :  { %v151_v11 = vpop.f32.mrb[1].mxu0  ;;  %v2090_v13 = vadd.f32 %v1724_v9, %v1640_v8 }
 0x116   :  { %v2082_v12 = vadd.f32 %v1640_v8, %v151_v11 }
 0x118   :  { %166 = vrot.lane.b32.xlu1 %v2082_v12, %s1979_s12  ;;  %162 = vrot.lane.b32.xlu0 %v2082_v12, %s1980_s13 }
 0x11c   :  { %168 = vrot.lane.b32.xlu1 %v2090_v13, %s1979_s12  ;;  %164 = vrot.lane.b32.xlu0 %v2090_v13, %s1980_s13 }
 0x120   :  { %172 = vrot.lane.b32.xlu1 %v2090_v13, %s1982_s2  ;;  %170 = vrot.lane.b32.xlu0 %v2082_v12, %s1982_s2 }
 0x124   :  { %251 = vrot.lane.b32.xlu1 %v2090_v13, %s1983_s14  ;;  %174 = vrot.lane.b32.xlu0 %v2082_v12, %s1983_s14 }
 0x18a   :  { %v2098_v14 = vpop.permute.xlu1 %166  ;;  %v2100_v15 = vpop.permute.xlu0 %162 }
 0x18b   :  { %327 = vrot.lane.b32.xlu0 %v2100_v15, %s1983_s14 }
 0x18e   :  { %v2103_v16 = vpop.permute.xlu1 %168  ;;  %v2105_v17 = vpop.permute.xlu0 %164 }
 0x18f   :  { %479 = vrot.lane.b32.xlu0 %v2098_v14, %s1983_s14  ;;  %403 = vrot.lane.b32.xlu1 %v2105_v17, %s1983_s14 }
 0x192   :  { %v2109_v18 = vpop.permute.xlu0 %170  ;;  %v2113_v19 = vpop.permute.xlu1 %172 }
 0x193   :  { %555 = vrot.lane.b32.xlu1 %v2103_v16, %s1983_s14  ;;  %631 = vrot.lane.b32.xlu0 %v2109_v18, %s1983_s14 }
 0x196   :  { %v175_v20 = vpop.permute.xlu0 %174  ;;  %v252_v21 = vpop.permute.xlu1 %251 }
 0x197   :  { %707 = vrot.lane.b32.xlu1 %v2113_v19, %s1983_s14  ;;  %1726 = vmatpush3.xpose.msk.msra.mxu1 %vm176_vm2, %v175_v20 }
 0x198   :  { %1730 = vmatprep.subr.mxu1 %v1978_v10 }
 0x19a   :  { %1728 = vmatmul.mubr.msk.f32.vlgmr.msra.gmra.mrb[0].mxu1 %vm176_vm2, %v2082_v12 }
 0x19b   :  { %1731 = vmatpush3.xpose.msk.msra.mxu1 %vm176_vm2, %v252_v21  ;;  %1732 = vmatprep.mubr.msk.f32.mxu1 %vm1981_vm1, %v1978_v10 }
 0x19c   :  { %1735 = vmatprep.subr.mxu1 %v1978_v10 }
 0x19e   :  { %1733 = vmatmul.mubr.msk.f32.vlgmr.msra.gmra.mrb[2].mxu1 %vm176_vm2, %v2090_v13 }
 0x19f   :  { %1737 = vmatprep.mubr.msk.f32.mxu1 %vm1981_vm1, %v1978_v10 }
 0x1fd   :  { %v328_v22 = vpop.permute.xlu0 %327 }
 0x1fe   :  { %1736 = vmatpush3.xpose.msk.msra.mxu1 %vm176_vm2, %v328_v22 }
 0x1ff   :  { %1740 = vmatprep.subr.mxu1 %v1978_v10 }
 0x201   :  { %v404_v23 = vpop.permute.xlu1 %403  ;;  %1738 = vmatmul.mubr.msk.f32.vlgmr.msra.gmra.mrb[4].mxu1 %vm176_vm2, %v2100_v15  ;;  %v480_v24 = vpop.permute.xlu0 %479 }
 0x202   :  { %1741 = vmatpush3.xpose.msk.msra.mxu1 %vm176_vm2, %v404_v23  ;;  %1746 = vmatpush3.xpose.msk.msra.mxu0 %vm176_vm2, %v480_v24 }
 0x203   :  { %1742 = vmatprep.mubr.msk.f32.mxu1 %vm1981_vm1, %v1978_v10  ;;  %1750 = vmatprep.subr.mxu1 %v1978_v10 }
 0x204   :  { %1755 = vmatprep.subr.mxu0 %v1978_v10 }
 0x205   :  { %v556_v25 = vpop.permute.xlu1 %555  ;;  %1743 = vmatmul.mubr.msk.f32.vlgmr.msra.gmra.mrb[6].mxu1 %vm176_vm2, %v2105_v17  ;;  %1748 = vmatmul.mubr.msk.f32.vlgmr.msra.gmra.mrb[2].mxu0 %vm176_vm2, %v2098_v14  ;;  %v632_v26 = vpop.permute.xlu0 %631 }
 0x206   :  { %1751 = vmatpush3.xpose.msk.msra.mxu1 %vm176_vm2, %v556_v25  ;;  %1756 = vmatpush3.xpose.msk.msra.mxu0 %vm176_vm2, %v632_v26 }
 0x207   :  { %1752 = vmatprep.mubr.msk.f32.mxu1 %vm1981_vm1, %v1978_v10  ;;  %1757 = vmatprep.mubr.msk.f32.mxu0 %vm1981_vm1, %v1978_v10 }
 0x208   :  { %1760 = vmatprep.subr.mxu1 %v1978_v10  ;;  %1765 = vmatprep.subr.mxu0 %v1978_v10 }
 0x209   :  { %v708_v27 = vpop.permute.xlu1 %707  ;;  %1753 = vmatmul.mubr.msk.f32.vlgmr.msra.gmra.mrb[8].mxu1 %vm176_vm2, %v2103_v16  ;;  %1758 = vmatmul.mubr.msk.f32.vlgmr.msra.gmra.mrb[4].mxu0 %vm176_vm2, %v2109_v18 }
 0x20a   :  { %1761 = vmatpush3.xpose.msk.msra.mxu1 %vm176_vm2, %v708_v27  ;;  %1762 = vmatprep.mubr.msk.f32.mxu1 %vm1981_vm1, %v1978_v10 }
 0x20b   :  { %1770 = vmatprep.subr.mxu1 %v1978_v10  ;;  %1767 = vmatprep.mubr.msk.f32.mxu0 %vm1981_vm1, %v1978_v10 }
 0x20d   :  { %1763 = vmatmul.mubr.msk.f32.vlgmr.msra.gmra.mrb[10].mxu1 %vm176_vm2, %v2113_v19 }
 0x20e   :  { %1772 = vmatprep.mubr.msk.f32.mxu1 %vm1981_vm1, %v1978_v10 }
 0x26d   :  { %v247_v28 = vpop.f32.mrb[0].mxu1 }
 0x26e   :  { %v783_v30 = vmul.f32 0.35355338, %v247_v28  ;;  %v1729_v31 = vpop.f32.mrb[1].mxu1 }
 0x270   :  { %v792_v32 = vadd.f32 %v791_v29, %v783_v30 }
 0x271   :  { %v323_v33 = vpop.f32.mrb[2].mxu1 }
 0x272   :  { %v784_v34 = vmul.f32 0.35355338, %v323_v33  ;;  %v1734_v35 = vpop.f32.mrb[3].mxu1  ;;  %v800_v36 = vsel %vm176_vm2, %v792_v32, -inf }
 0x273   :  { %801 = vmax.xlane.f32.xlu0 %v800_v36 }
 0x274   :  { %v793_v37 = vadd.f32 %v791_v29, %v784_v34 }
 0x276   :  { %v803_v38 = vsel %vm176_vm2, %v793_v37, -inf }
 0x277   :  { %804 = vmax.xlane.f32.xlu1 %v803_v38 }
 0x2d4   :  { %v399_v39 = vpop.f32.mrb[4].mxu1 }
 0x2d5   :  { %v785_v40 = vmul.f32 0.35355338, %v399_v39  ;;  %v1739_v41 = vpop.f32.mrb[5].mxu1 }
 0x2d7   :  { %v794_v42 = vadd.f32 %v791_v29, %v785_v40 }
 0x2d8   :  { %v475_v43 = vpop.f32.mrb[6].mxu1  ;;  %v551_v44 = vpop.f32.mrb[2].mxu0 }
 0x2d9   :  { %v786_v45 = vmul.f32 0.35355338, %v475_v43  ;;  %v787_v46 = vmul.f32 0.35355338, %v551_v44  ;;  %v1744_v47 = vpop.f32.mrb[7].mxu1  ;;  %v1749_v48 = vpop.f32.mrb[3].mxu0 }
 0x2da   :  { %v806_v49 = vsel %vm176_vm2, %v794_v42, -inf }
 0x2db   :  { %807 = vmax.xlane.f32.xlu0 %v806_v49  ;;  %v795_v50 = vadd.f32 %v791_v29, %v786_v45  ;;  %v796_v51 = vadd.f32 %v791_v29, %v787_v46 }
 0x2dc   :  { %v627_v52 = vpop.f32.mrb[8].mxu1  ;;  %v703_v53 = vpop.f32.mrb[4].mxu0 }
 0x2dd   :  { %v788_v54 = vmul.f32 0.35355338, %v627_v52  ;;  %v789_v55 = vmul.f32 0.35355338, %v703_v53  ;;  %v1754_v56 = vpop.f32.mrb[9].mxu1  ;;  %v1759_v57 = vpop.f32.mrb[5].mxu0 }
 0x2de   :  { %v809_v58 = vsel %vm176_vm2, %v795_v50, -inf  ;;  %v812_v59 = vsel %vm176_vm2, %v796_v51, -inf }
 0x2df   :  { %810 = vmax.xlane.f32.xlu0 %v809_v58  ;;  %813 = vmax.xlane.f32.xlu1 %v812_v59  ;;  %v797_v60 = vadd.f32 %v791_v29, %v788_v54  ;;  %v798_v61 = vadd.f32 %v791_v29, %v789_v55 }
 0x2e0   :  { %v779_v62 = vpop.f32.mrb[10].mxu1 }
 0x2e1   :  { %v790_v63 = vmul.f32 0.35355338, %v779_v62  ;;  %v1764_v0 = vpop.f32.mrb[11].mxu1  ;;  %v815_v1 = vsel %vm176_vm2, %v797_v60, -inf  ;;  %v818_v2 = vsel %vm176_vm2, %v798_v61, -inf }
 0x2e3   :  { %816 = vmax.xlane.f32.xlu0 %v815_v1  ;;  %819 = vmax.xlane.f32.xlu1 %v818_v2  ;;  %v799_v3 = vadd.f32 %v791_v29, %v790_v63 }
 0x2e5   :  { %v821_v4 = vsel %vm176_vm2, %v799_v3, -inf }
 0x2e7   :  { %822 = vmax.xlane.f32.xlu0 %v821_v4 }
 0x2f4   :  { %888 = vrot.lane.b32.xlu1 %v2082_v12, %s1984_s3 }
 0x2f8   :  { %1040 = vrot.lane.b32.xlu1 %v2100_v15, %s1984_s3 }
 0x2fc   :  { %1116 = vrot.lane.b32.xlu1 %v2105_v17, %s1984_s3 }
 0x2fd   :  { %964 = vrot.lane.b32.xlu0 %v2090_v13, %s1984_s3 }
 0x300   :  { %1268 = vrot.lane.b32.xlu1 %v2103_v16, %s1984_s3  ;;  %v802_v7 = vpop.xlane.xlu0 %801 }
 0x301   :  { %1192 = vrot.lane.b32.xlu0 %v2098_v14, %s1984_s3  ;;  %v824_v8 = vsub.f32 %v792_v32, %v802_v7 }
 0x303   :  { %v832_v11 = vmul.f32 1.442695, %v824_v8 }
 0x304   :  { %v805_v5 = vpop.xlane.xlu1 %804 }
 0x305   :  { %v825_v6 = vsub.f32 %v793_v37, %v805_v5 }
 0x307   :  { %v834_v9 = vmul.f32 1.442695, %v825_v6 }
 0x309   :  { %1847 = vpow2.f32 %v834_v9 }
 0x30a   :  { %1849 = vpow2.f32 %v832_v11 }
 0x313   :  { %v2187_v12 = vpop.eup %1847 }
 0x314   :  { %v851_v15 = vsel %vm176_vm2, %v2187_v12, 0.0  ;;  %v2191_v13 = vpop.eup %1849 }
 0x315   :  { %v848_v16 = vsel %vm176_vm2, %v2191_v13, 0.0 }
 0x320   :  { %852 = vadd.xlane.f32.xlu0 %v851_v15 }
 0x324   :  { %849 = vadd.xlane.f32.xlu1 %v848_v16 }
 0x368   :  { %v808_v14 = vpop.xlane.xlu0 %807 }
 0x369   :  { %v826_v17 = vsub.f32 %v794_v42, %v808_v14 }
 0x36b   :  { %v836_v20 = vmul.f32 1.442695, %v826_v17 }
 0x36c   :  { %v814_v21 = vpop.xlane.xlu1 %813  ;;  %v811_v22 = vpop.xlane.xlu0 %810 }
 0x36d   :  { %1851 = vpow2.f32 %v836_v20  ;;  %v828_v23 = vsub.f32 %v796_v51, %v814_v21  ;;  %v827_v24 = vsub.f32 %v795_v50, %v811_v22  ;;  %v1528_v21 = vld [vmem:[#allocation7] sm:$0xff]  ;;  %v1529_v22 = vld [vmem:[#allocation7 + $0x8] sm:$0xff] }
 0x36f   :  { %v840_v25 = vmul.f32 1.442695, %v828_v23  ;;  %v838_v26 = vmul.f32 1.442695, %v827_v24  ;;  %v1824_v23 = vpack.c.bf16 %v1529_v22, %v1528_v21  ;;  %v1530_v24 = vld [vmem:[#allocation7 + $0x10] sm:$0xff] }
 0x370   :  { %v820_v27 = vpop.xlane.xlu1 %819  ;;  %v817_v28 = vpop.xlane.xlu0 %816 }
 0x371   :  { %1853 = vpow2.f32 %v840_v25  ;;  %v830_v29 = vsub.f32 %v798_v61, %v820_v27  ;;  %v829_v30 = vsub.f32 %v797_v60, %v817_v28  ;;  %v1531_v25 = vld [vmem:[#allocation7 + $0x18] sm:$0xff] }
 0x372   :  { %1855 = vpow2.f32 %v838_v26  ;;  %v1828_v26 = vpack.c.bf16 %v1531_v25, %v1530_v24 }
 0x373   :  { %v844_v31 = vmul.f32 1.442695, %v830_v29  ;;  %v842_v32 = vmul.f32 1.442695, %v829_v30 }
 0x374   :  { %v889_v33 = vpop.permute.xlu1 %888  ;;  %v823_v34 = vpop.xlane.xlu0 %822 }
 0x375   :  { %1857 = vpow2.f32 %v844_v31  ;;  %v831_v35 = vsub.f32 %v799_v3, %v823_v34  ;;  %1766 = vmatpush3.msra.mxu0 %v889_v33 }
 0x376   :  { %1859 = vpow2.f32 %v842_v32  ;;  %1775 = vmatprep.subr.mxu0 %v1978_v10 }
 0x377   :  { %v1852_v36 = vpop.eup %1851  ;;  %v846_v37 = vmul.f32 1.442695, %v831_v35 }
 0x378   :  { %v965_v38 = vpop.permute.xlu0 %964  ;;  %v854_v39 = vsel %vm176_vm2, %v1852_v36, 0.0  ;;  %v1041_v50 = vpop.permute.xlu1 %1040 }
 0x379   :  { %1861 = vpow2.f32 %v846_v37  ;;  %855 = vadd.xlane.f32.xlu1 %v854_v39  ;;  %1771 = vmatpush3.msra.mxu1 %v965_v38 }
 0x37a   :  { %1780 = vmatprep.subr.mxu1 %v1978_v10 }
 0x37b   :  { %v1854_v40 = vpop.eup %1853 }
 0x37c   :  { %v1856_v41 = vpop.eup %1855  ;;  %v860_v42 = vsel %vm176_vm2, %v1854_v40, 0.0  ;;  %v1117_v51 = vpop.permute.xlu1 %1116 }
 0x37d   :  { %861 = vadd.xlane.f32.xlu1 %v860_v42  ;;  %v857_v43 = vsel %vm176_vm2, %v1856_v41, 0.0  ;;  %v1193_v52 = vpop.permute.xlu0 %1192 }
 0x37e   :  { %858 = vadd.xlane.f32.xlu0 %v857_v43 }
 0x37f   :  { %v1858_v44 = vpop.eup %1857 }
 0x380   :  { %v1860_v45 = vpop.eup %1859  ;;  %v866_v46 = vsel %vm176_vm2, %v1858_v44, 0.0  ;;  %v1269_v53 = vpop.permute.xlu1 %1268 }
 0x381   :  { %867 = vadd.xlane.f32.xlu1 %v866_v46  ;;  %v863_v47 = vsel %vm176_vm2, %v1860_v45, 0.0 }
 0x382   :  { %864 = vadd.xlane.f32.xlu0 %v863_v47 }
 0x383   :  { %v2202_v48 = vpop.eup %1861 }
 0x384   :  { %v869_v49 = vsel %vm176_vm2, %v2202_v48, 0.0 }
 0x386   :  { %870 = vadd.xlane.f32.xlu0 %v869_v49 }
 0x392   :  { %1420 = vrot.lane.b32.xlu1 %v2113_v19, %s1984_s3 }
 0x39c   :  { %1344 = vrot.lane.b32.xlu0 %v2109_v18, %s1984_s3 }
 0x3ad   :  { %v853_v54 = vpop.xlane.xlu0 %852 }
 0x3ae   :  { %1863 = vrcp.f32 %v853_v54 }
 0x3b1   :  { %v850_v55 = vpop.xlane.xlu1 %849 }
 0x3b2   :  { %1865 = vrcp.f32 %v850_v55 }
 0x3b8   :  { %v1864_v56 = vpop.eup %1863 }
 0x3b9   :  { %v881_v57 = vmul.f32 %v1864_v56, %v2187_v12 }
 0x3bb   :  { %1773 = vmatmul.mubr.msk.f32.vlgmr.msra.gmra.mrb[12].mxu1 %vm176_vm2, %v881_v57 }
 0x3bc   :  { %v1866_v58 = vpop.eup %1865  ;;  %1781 = vmatpush3.msra.mxu1 %v1117_v51  ;;  %1782 = vmatprep.mubr.msk.f32.mxu1 %vm1981_vm1, %v1978_v10 }
 0x3bd   :  { %v880_v18 = vmul.f32 %v1866_v58, %v2191_v13  ;;  %1790 = vmatprep.subr.mxu1 %v1978_v10 }
 0x3bf   :  { %1768 = vmatmul.mubr.msk.f32.vlgmr.msra.gmra.mrb[6].mxu0 %vm176_vm2, %v880_v18 }
 0x3c0   :  { %1776 = vmatpush3.msra.mxu0 %v1041_v50  ;;  %1777 = vmatprep.mubr.msk.f32.mxu0 %vm1981_vm1, %v1978_v10  ;;  %v1667_v50 = vld [vmem:[%s2268_s5] ss:$0 sm:$0xff] }
 0x3c1   :  { %1785 = vmatprep.subr.mxu0 %v1978_v10 }
 0x406   :  { %v856_v19 = vpop.xlane.xlu1 %855 }
 0x407   :  { %1867 = vrcp.f32 %v856_v19 }
 0x40a   :  { %v862_v59 = vpop.xlane.xlu1 %861 }
 0x40b   :  { %1869 = vrcp.f32 %v862_v59  ;;  %v859_v60 = vpop.xlane.xlu0 %858 }
 0x40c   :  { %1871 = vrcp.f32 %v859_v60 }
 0x40e   :  { %v868_v61 = vpop.xlane.xlu1 %867 }
 0x40f   :  { %1873 = vrcp.f32 %v868_v61  ;;  %v865_v62 = vpop.xlane.xlu0 %864 }
 0x410   :  { %1875 = vrcp.f32 %v865_v62 }
 0x411   :  { %v1868_v63 = vpop.eup %1867 }
 0x412   :  { %v882_v0 = vmul.f32 %v1868_v63, %v1852_v36  ;;  %v1421_v12 = vpop.permute.xlu1 %1420 }
 0x413   :  { %v871_v1 = vpop.xlane.xlu0 %870 }
 0x414   :  { %1877 = vrcp.f32 %v871_v1  ;;  %1778 = vmatmul.mubr.msk.f32.vlgmr.msra.gmra.mrb[8].mxu0 %vm176_vm2, %v882_v0 }
 0x415   :  { %v1870_v2 = vpop.eup %1869  ;;  %1786 = vmatpush3.msra.mxu0 %v1193_v52  ;;  %1787 = vmatprep.mubr.msk.f32.mxu0 %vm1981_vm1, %v1978_v10 }
 0x416   :  { %v1872_v3 = vpop.eup %1871  ;;  %v884_v4 = vmul.f32 %v1870_v2, %v1854_v40  ;;  %1795 = vmatprep.subr.mxu0 %v1978_v10 }
 0x417   :  { %v883_v5 = vmul.f32 %v1872_v3, %v1856_v41  ;;  %v1345_v6 = vpop.permute.xlu0 %1344 }
 0x418   :  { %1788 = vmatmul.mubr.msk.f32.vlgmr.msra.gmra.mrb[10].mxu0 %vm176_vm2, %v884_v4 }
 0x419   :  { %v1874_v7 = vpop.eup %1873  ;;  %1783 = vmatmul.mubr.msk.f32.vlgmr.msra.gmra.mrb[14].mxu1 %vm176_vm2, %v883_v5  ;;  %1796 = vmatpush3.msra.mxu0 %v1345_v6 }
 0x41a   :  { %v1876_v8 = vpop.eup %1875  ;;  %v886_v9 = vmul.f32 %v1874_v7, %v1858_v44  ;;  %1791 = vmatpush3.msra.mxu1 %v1269_v53  ;;  %1792 = vmatprep.mubr.msk.f32.mxu1 %vm1981_vm1, %v1978_v10 }
 0x41b   :  { %v885_v11 = vmul.f32 %v1876_v8, %v1860_v45  ;;  %1797 = vmatprep.mubr.msk.f32.mxu0 %vm1981_vm1, %v1978_v10  ;;  %1800 = vmatprep.subr.mxu1 %v1978_v10 }
 0x41c   :  { %1798 = vmatmul.mubr.msk.f32.vlgmr.msra.gmra.mrb[12].mxu0 %vm176_vm2, %v886_v9  ;;  %1825 = vmatprep.subr.bf16.mxu0 %v1824_v23 }
 0x41d   :  { %1793 = vmatmul.mubr.msk.f32.vlgmr.msra.gmra.mrb[16].mxu1 %vm176_vm2, %v885_v11  ;;  %1827 = vmatpush3.bf16.msra.mxu0 %v1824_v23 }
 0x41e   :  { %v1878_v15 = vpop.eup %1877  ;;  %1801 = vmatpush3.msra.mxu1 %v1421_v12  ;;  %1802 = vmatprep.mubr.msk.f32.mxu1 %vm1981_vm1, %v1978_v10 }
 0x41f   :  { %v887_v13 = vmul.f32 %v1878_v15, %v2202_v48  ;;  %1829 = vmatprep.subr.bf16.mxu0 %v1828_v26 }
 0x421   :  { %1803 = vmatmul.mubr.msk.f32.vlgmr.msra.gmra.mrb[18].mxu1 %vm176_vm2, %v887_v13  ;;  %1831 = vmatpush3.bf16.msra.mxu0 %v1828_v26 }
 0x48e   :  { %v1036_v16 = vpop.f32.mrb[12].mxu1 }
 0x48f   :  { %v1774_v14 = vpop.f32.mrb[13].mxu1 }
 0x492   :  { %v960_v17 = vpop.f32.mrb[6].mxu0 }
 0x493   :  { %v1769_v20 = vpop.f32.mrb[7].mxu0 }
 0x4e7   :  { %v1112_v27 = vpop.f32.mrb[8].mxu0 }
 0x4e8   :  { %v1779_v10 = vpop.f32.mrb[9].mxu0  ;;  %1498 = vrot.lane.b32.xlu0 %v1112_v27, %s1976_s10 }
 0x4eb   :  { %v1264_v28 = vpop.f32.mrb[10].mxu0 }
 0x4ec   :  { %v1188_v29 = vpop.f32.mrb[14].mxu1  ;;  %1506 = vrot.lane.b32.xlu0 %v1264_v28, %s1985_s17  ;;  %v1789_v30 = vpop.f32.mrb[11].mxu0 }
 0x4ed   :  { %1500 = vrot.lane.b32.xlu1 %v1188_v29, %s1976_s10  ;;  %v1784_v31 = vpop.f32.mrb[15].mxu1 }
 0x4ef   :  { %v1416_v32 = vpop.f32.mrb[12].mxu0 }
 0x4f0   :  { %v1340_v33 = vpop.f32.mrb[16].mxu1  ;;  %1514 = vrot.lane.b32.xlu0 %v1416_v32, %s1986_s18  ;;  %v1799_v34 = vpop.f32.mrb[13].mxu0 }
 0x4f1   :  { %1508 = vrot.lane.b32.xlu1 %v1340_v33, %s1985_s17  ;;  %v1794_v35 = vpop.f32.mrb[17].mxu1 }
 0x4f4   :  { %v1492_v36 = vpop.f32.mrb[18].mxu1 }
 0x4f5   :  { %1516 = vrot.lane.b32.xlu1 %v1492_v36, %s1986_s18  ;;  %v1804_v37 = vpop.f32.mrb[19].mxu1 }
 0x55a   :  { %v1499_v38 = vpop.permute.xlu0 %1498 }
 0x55b   :  { %v1520_v41 = vsel %vm176_vm2, %v960_v17, %v1499_v38 }
 0x55e   :  { %v1507_v39 = vpop.permute.xlu0 %1506 }
 0x55f   :  { %v1501_v40 = vpop.permute.xlu1 %1500  ;;  %v1523_v42 = vsel %vm1522_vm3, %v1520_v41, %v1507_v39 }
 0x560   :  { %v1521_v46 = vsel %vm176_vm2, %v1036_v16, %v1501_v40 }
 0x562   :  { %v1515_v43 = vpop.permute.xlu0 %1514 }
 0x563   :  { %v1509_v44 = vpop.permute.xlu1 %1508  ;;  %v1526_v45 = vsel %vm1525_vm4, %v1523_v42, %v1515_v43 }
 0x564   :  { %1813 = vmatprep.mubr.msk.f32.mxu0 %vm78_vm0, %v1526_v45  ;;  %v1524_v47 = vsel %vm1522_vm3, %v1521_v46, %v1509_v44 }
 0x567   :  { %v1517_v48 = vpop.permute.xlu1 %1516 }
 0x568   :  { %v1527_v49 = vsel %vm1525_vm4, %v1524_v47, %v1517_v48 }
 0x569   :  { %1814 = vmatmul.mubr.msk.f32.vlgmr.msra.gmra.mrb[14].mxu0 %vm78_vm0, %v1527_v49 }
 0x63c   :  { %v1815_v51 = vpop.f32.mrb[14].mxu0 }
 0x63d   :  { %v1617_v52 = vadd.f32 %v1815_v51, %v1667_v50  ;;  %v1611_v53 = vpop.f32.mrb[15].mxu0 }
 0x63e   :  { %v1612_v54 = vadd.f32 %v1667_v50, %v1611_v53 }
 0x63f   :  { %1621 = vst.msk [vmem:[#allocation8 + $0x8] sm:$0xff] %vm78_vm0, %v1617_v52 }
 0x640   :  { %1620 = vst.msk [vmem:[#allocation8] sm:$0xff] %vm78_vm0, %v1612_v54 }
 0x641   :  { %1956 = shalt.err (!%p1953_p0)
}
 0x642   :  { %s1957_s25 = scalar_lea.hbm %s2269_s6, 256 }
 0x643   :  { %p1958_p1 = scmp.ne.s32.totalorder %s2269_s6, %s1957_s25  ;;  %p1961_p2 = scmp.lt.u32.totalorder %s1957_s25, %s2269_s6 }
 0x645   :  { %p1963_p3 = pnand %p1961_p2, %p1958_p1 }
 0x647   :  { %1966 = shalt.err (!%p1963_p3)
}
 0x648   :  { %1633 = dma.vmem_to_hbm [thread:$0]  %s1628_s21, 256, %s2269_s6, [#allocation4], %s1975_s9, %s1975_s9, %s1976_s10  }
 0x649   :  { %1971 = dma.done.wait [#allocation4], 256  }
 0x64a   :  { %1972 = vsyncadd [#allocation4], 4294967040 }
 0x64b   :  { %1637 = vsyncpa [#allocation3], 1 }
 0x64c   :  { %1638 = vsyncpa [#allocation6], 1 }
 0x64d   :  { %1639 = vsyncpa [#allocation4], 1 }

</bundles_post_ra>
